<compile_context>
chip_gen: v6e
topology: v6e:2x2x1
jax: 0.10.0
libtpu: 0.0.40
codegen_flags: <defaults>
</compile_context>

<pallas_src>
import jax
import jax.numpy as jnp
from jax.experimental import pallas as pl
from jax.experimental.pallas import tpu as pltpu

HIDDEN = 64


def _round_up(v, m):
    return ((v + m - 1) // m) * m


def qnetwork_kernel(x_ref, w1_ref, b1_ref, w2_ref, b2_ref, out_ref):
    # fc1: (tb, S) @ (S, H) on the MXU, f32 accumulate, bias + ReLU on the VPU.
    h = jnp.dot(x_ref[...], w1_ref[...], preferred_element_type=jnp.float32)
    h = jnp.maximum(h + b1_ref[...], 0.0)
    # fc2: (tb, H) @ (H, A), f32 accumulate, bias add; compact store.
    y = jnp.dot(h, w2_ref[...], preferred_element_type=jnp.float32)
    out_ref[...] = (y + b2_ref[...]).astype(out_ref.dtype)


def prepare_params(w1, b1, w2, b2):
    """One-time parameter preprocessing, hoisted out of the forward path.

    Weights are stored transposed vs PyTorch: (in_features, out_features)."""
    return (w1.astype(jnp.float32),
            b1.reshape(1, -1).astype(jnp.float32),
            w2.astype(jnp.float32),
            b2.reshape(1, -1).astype(jnp.float32))


def qnetwork_forward(x, w1, b1, w2, b2, *, block_b=4096):
    """x: (B, num_states) f32; params as returned by prepare_params."""
    B, S = x.shape
    H = w1.shape[1]
    A = w2.shape[1]

    orig_B = B
    if B < 8:
        # Tiny-batch edge case only: pad rows to sublane granularity (8).
        x = jnp.zeros((8, S), x.dtype).at[:B].set(x)
        B = 8

    # Batch tile: multiple of 8 sublanes, capped by block_b (VMEM budget) and
    # by ~ceil(B/2) so the grid has >=2 steps whenever B permits (keeps both
    # TensorCores busy on v7x via the "parallel" dimension semantics).
    tb = min(block_b, max(8, _round_up(pl.cdiv(B, 2), 8)))
    grid = (pl.cdiv(B, tb),)  # ragged last tile handled by Pallas clipping

    flops = 2 * B * (S * H + H * A)
    bytes_accessed = (B * S * 4 + S * H * 4 + H * 4 + H * A * 4 + A * 4
                      + B * A * 4)

    out = pl.pallas_call(
        qnetwork_kernel,
        out_shape=jax.ShapeDtypeStruct((B, A), jnp.float32),
        grid=grid,
        in_specs=[
            pl.BlockSpec((tb, S), lambda i: (i, 0)),   # x: tiled over batch
            pl.BlockSpec((S, H), lambda i: (0, 0)),    # w1: VMEM-resident
            pl.BlockSpec((1, H), lambda i: (0, 0)),    # b1: VMEM-resident
            pl.BlockSpec((H, A), lambda i: (0, 0)),    # w2: VMEM-resident
            pl.BlockSpec((1, A), lambda i: (0, 0)),    # b2: VMEM-resident
        ],
        out_specs=pl.BlockSpec((tb, A), lambda i: (i, 0)),  # compact (B, A)
        compiler_params=pltpu.CompilerParams(
            dimension_semantics=("parallel",),   # shard batch tiles across TCs
            vmem_limit_bytes=32 * 1024 * 1024,
        ),
        cost_estimate=pl.CostEstimate(
            flops=flops, transcendentals=0, bytes_accessed=bytes_accessed),
    )(x, w1, b1, w2, b2)

    return out[:orig_B] if orig_B != B else out


def init_params(key, num_states, num_actions, hidden=HIDDEN):
    # Deterministic init mimicking nn.Linear's uniform(-1/sqrt(fan_in), 1/sqrt(fan_in)).
    k1, k2, k3, k4 = jax.random.split(key, 4)
    lim1 = 1.0 / jnp.sqrt(jnp.float32(num_states))
    lim2 = 1.0 / jnp.sqrt(jnp.float32(hidden))
    w1 = jax.random.uniform(k1, (num_states, hidden), jnp.float32, -lim1, lim1)
    b1 = jax.random.uniform(k2, (1, hidden), jnp.float32, -lim1, lim1)
    w2 = jax.random.uniform(k3, (hidden, num_actions), jnp.float32, -lim2, lim2)
    b2 = jax.random.uniform(k4, (1, num_actions), jnp.float32, -lim2, lim2)
    return w1, b1, w2, b2


def _ref_f32(x, w1, b1, w2, b2):
    # Exact f32 reference matching the PyTorch module's forward.
    return jnp.maximum(x @ w1 + b1, 0.0) @ w2 + b2


if __name__ == "__main__":
    key = jax.random.PRNGKey(0)
    num_states = 16
    num_actions = 8

    kx, kp, kx2 = jax.random.split(key, 3)
    w1, b1, w2, b2 = init_params(kp, num_states, num_actions)
    params = prepare_params(w1, b1, w2, b2)   # hoisted one-time preprocessing

    # --- small case (single grid step) ---
    batch = 8
    x = jax.random.normal(kx, (batch, num_states), jnp.float32)
    out = jax.block_until_ready(qnetwork_forward(x, *params))
    assert out.shape == (batch, num_actions)
    # Tolerance covers any MXU f32-matmul pass decomposition on the target chip.
    assert jnp.allclose(out, _ref_f32(x, w1, b1, w2, b2), atol=2e-2, rtol=2e-2)

    # --- larger batch exercising the multi-step grid + ragged last tile ---
    batch2 = 300
    x2 = jax.random.normal(kx2, (batch2, num_states), jnp.float32)
    out2 = jax.block_until_ready(
        qnetwork_forward(x2, *params, block_b=128))  # grid = (3,), last tile clipped
    assert out2.shape == (batch2, num_actions)
    assert jnp.allclose(out2, _ref_f32(x2, w1, b1, w2, b2), atol=2e-2, rtol=2e-2)

    print("KERNEL_OK")
</pallas_src>

<mosaic_0001>
module attributes {stable_mosaic.version = 11 : i64} {
  func.func @qnetwork_kernel(%arg0: i32, %arg1: memref<8x16xf32, #tpu.memory_space<vmem>>, %arg2: memref<16x64xf32, #tpu.memory_space<vmem>>, %arg3: memref<1x64xf32, #tpu.memory_space<vmem>>, %arg4: memref<64x8xf32, #tpu.memory_space<vmem>>, %arg5: memref<1x8xf32, #tpu.memory_space<vmem>>, %arg6: memref<8x8xf32, #tpu.memory_space<vmem>>) attributes {dimension_semantics = [#tpu.dimension_semantics<parallel>], iteration_bounds = array<i64: 1>, scalar_prefetch = 0 : i64, scratch_operands = 0 : i64, tpu.core_type = #tpu.core_type<tc>, window_params = [{transform_indices = @transform_0, window_bounds = array<i64: 8, 16>}, {pipeline_mode = #tpu.pipeline_mode<synchronous>, transform_indices = @transform_1, window_bounds = array<i64: 16, 64>}, {pipeline_mode = #tpu.pipeline_mode<synchronous>, transform_indices = @transform_2, window_bounds = array<i64: 1, 64>}, {pipeline_mode = #tpu.pipeline_mode<synchronous>, transform_indices = @transform_3, window_bounds = array<i64: 64, 8>}, {pipeline_mode = #tpu.pipeline_mode<synchronous>, transform_indices = @transform_4, window_bounds = array<i64: 1, 8>}, {transform_indices = @transform_5, window_bounds = array<i64: 8, 8>}]} {
    %c0 = arith.constant 0 : index
    %c0_0 = arith.constant 0 : index
    %0 = vector.load %arg1[%c0, %c0_0] : memref<8x16xf32, #tpu.memory_space<vmem>>, vector<8x16xf32>
    %c0_1 = arith.constant 0 : index
    %c0_2 = arith.constant 0 : index
    %1 = vector.load %arg2[%c0_1, %c0_2] : memref<16x64xf32, #tpu.memory_space<vmem>>, vector<16x64xf32>
    %cst = arith.constant dense<0.000000e+00> : vector<8x64xf32>
    %2 = tpu.matmul %0, %1, %cst {dimension_numbers = #tpu.dot_dimension_numbers<[1], [0], [0], [1], [0, 0, 1, 1], [], []>} : vector<8x16xf32>, vector<16x64xf32>, vector<8x64xf32> -> vector<8x64xf32>
    %c0_3 = arith.constant 0 : index
    %c0_4 = arith.constant 0 : index
    %3 = vector.load %arg3[%c0_3, %c0_4] : memref<1x64xf32, #tpu.memory_space<vmem>>, vector<1x64xf32>
    %4 = vector.broadcast %3 : vector<1x64xf32> to vector<8x64xf32>
    %5 = arith.addf %2, %4 : vector<8x64xf32>
    %cst_5 = arith.constant 0.000000e+00 : f32
    %6 = vector.broadcast %cst_5 : f32 to vector<8x64xf32>
    %7 = arith.maximumf %5, %6 : vector<8x64xf32>
    %c0_6 = arith.constant 0 : index
    %c0_7 = arith.constant 0 : index
    %8 = vector.load %arg4[%c0_6, %c0_7] : memref<64x8xf32, #tpu.memory_space<vmem>>, vector<64x8xf32>
    %cst_8 = arith.constant dense<0.000000e+00> : vector<8x8xf32>
    %9 = tpu.matmul %7, %8, %cst_8 {dimension_numbers = #tpu.dot_dimension_numbers<[1], [0], [0], [1], [0, 0, 1, 1], [], []>} : vector<8x64xf32>, vector<64x8xf32>, vector<8x8xf32> -> vector<8x8xf32>
    %c0_9 = arith.constant 0 : index
    %c0_10 = arith.constant 0 : index
    %10 = vector.load %arg5[%c0_9, %c0_10] : memref<1x8xf32, #tpu.memory_space<vmem>>, vector<1x8xf32>
    %11 = vector.broadcast %10 : vector<1x8xf32> to vector<8x8xf32>
    %12 = arith.addf %9, %11 : vector<8x8xf32>
    %c0_11 = arith.constant 0 : index
    %c0_12 = arith.constant 0 : index
    %13 = vector.load %arg6[%c0_11, %c0_12] : memref<8x8xf32, #tpu.memory_space<vmem>>, vector<8x8xf32>
    tpu.vector_store %arg6[%c0_11, %c0_12], %12 {strides = array<i32>} : memref<8x8xf32, #tpu.memory_space<vmem>>, vector<8x8xf32>,
    return
  }
  func.func @transform_0(%arg0: i32) -> (i32, i32) {
    %c0_i32 = arith.constant 0 : i32
    %c0_i32_0 = arith.constant 0 : i32
    return %arg0, %c0_i32 : i32, i32
  }
  func.func @transform_1(%arg0: i32) -> (i32, i32) {
    %c0_i32 = arith.constant 0 : i32
    %c0_i32_0 = arith.constant 0 : i32
    %c0_i32_1 = arith.constant 0 : i32
    return %c0_i32, %c0_i32_0 : i32, i32
  }
  func.func @transform_2(%arg0: i32) -> (i32, i32) {
    %c0_i32 = arith.constant 0 : i32
    %c0_i32_0 = arith.constant 0 : i32
    %c0_i32_1 = arith.constant 0 : i32
    return %c0_i32, %c0_i32_0 : i32, i32
  }
  func.func @transform_3(%arg0: i32) -> (i32, i32) {
    %c0_i32 = arith.constant 0 : i32
    %c0_i32_0 = arith.constant 0 : i32
    %c0_i32_1 = arith.constant 0 : i32
    return %c0_i32, %c0_i32_0 : i32, i32
  }
  func.func @transform_4(%arg0: i32) -> (i32, i32) {
    %c0_i32 = arith.constant 0 : i32
    %c0_i32_0 = arith.constant 0 : i32
    %c0_i32_1 = arith.constant 0 : i32
    return %c0_i32, %c0_i32_0 : i32, i32
  }
  func.func @transform_5(%arg0: i32) -> (i32, i32) {
    %c0_i32 = arith.constant 0 : i32
    %c0_i32_0 = arith.constant 0 : i32
    return %arg0, %c0_i32 : i32, i32
  }
}

</mosaic_0001>

<bundles_post_ra>
// kernel: tpu_custom_call.1
= control target key start
LH: loop header
LB: loop body
LE: loop exit
PB: predicated region body
PF: predicated region fallthrough
CT: control target
= control target key end

     0   :  { %v278_v1 = vmov 0.0   ;;  %vm279_vm0 = vmmov 0   ;;  %vm31_vm1 = vcmask 130048   ;;  %s355_s0 = inlined_call_operand.vmem [shape: f32[8,16], index: 0, kind: input, shape index: {}]   ;;  %s356_s1 = inlined_call_operand.vmem [shape: f32[16,64], index: 1, kind: input, shape index: {}]   ;;  %s357_s2 = inlined_call_operand.vmem [shape: f32[1,64], index: 2, kind: input, shape index: {}]   ;;  %s358_s3 = inlined_call_operand.vmem [shape: f32[64,8], index: 3, kind: input, shape index: {}]   ;;  %s359_s4 = inlined_call_operand.vmem [shape: f32[1,8], index: 4, kind: input, shape index: {}]   ;;  %s360_s5 = inlined_call_operand.hbm [shape: f32[8,8], index: 5, kind: output, shape index: {}]  }
   0x1   :  { %v23_v0 = vld [vmem:[%s356_s1 + $0x8] sm:$0xff]  ;;  %227 = vmatprep.subr.mxu0 %v278_v1  ;;  %v22_v2 = vld [vmem:[%s356_s1] sm:$0xff]  ;;  %231 = vmatprep.mubr.msk.f32.mxu0 %vm279_vm0, %v278_v1  ;;  %v113_v3 = vld [vmem:[%s358_s3 + $0x38] sm:$0xff] }
   0x2   :  { %228 = vmatpush3.msra.mxu0 %v23_v0  ;;  %v21_v4 = vld [vmem:[%s355_s0] sm:$0xff]  ;;  %234 = vmatprep.subr.mxu1 %v278_v1  ;;  %v112_v5 = vld [vmem:[%s358_s3 + $0x30] sm:$0xff] }
   0x3   :  { %229 = vmatprep.subr.mxu0 %v278_v1  ;;  %235 = vmatpush3.msra.mxu1 %v113_v3 }
   0x4   :  { %10 = vsyncpa [#allocation3], 0  ;;  %230 = vmatpush3.msra.mxu0 %v22_v2  ;;  %236 = vmatprep.subr.mxu1 %v278_v1  ;;  %v111_v6 = vld [vmem:[%s358_s3 + $0x28] sm:$0xff]  ;;  %v110_v7 = vld [vmem:[%s358_s3 + $0x20] sm:$0xff]  ;;  %vm121_vm2 = vcmask 523264   ;;  %s280_s17 = smov [#allocation2]  }
   0x5   :  { %232 = vmatmul.mubr.msk.f32.vlgmr.msra.gmra.mxu0 %vm31_vm1, %v21_v4  ;;  %237 = vmatpush3.msra.mxu1 %v112_v5  ;;  %v109_v8 = vld [vmem:[%s358_s3 + $0x18] sm:$0xff]  ;;  %v108_v9 = vld [vmem:[%s358_s3 + $0x10] sm:$0xff]  ;;  %v107_v10 = vld [vmem:[%s358_s3 + $0x8] sm:$0xff]  ;;  %s203_s18 = sshll.u32 %s280_s17, 4  ;;  %vm195_vm3 = vcmask 64512   ;;  %s204_s18 = int_to_ptr.vmem [resolvable:$true] %s203_s18 }
   0x6   :  { %238 = vmatprep.subr.mxu1 %v278_v1  ;;  %250 = vmatprep.mubr.msk.f32.mxu1 %vm279_vm0, %v278_v1  ;;  %v106_v11 = vld [vmem:[%s358_s3] sm:$0xff]  ;;  %s256_s3 = scalar_lea.vmem %s204_s18, 128  ;;  %p261_p1 = scmp.lt.s32.totalorder %s204_s18, %s204_s18 }
   0x7   :  { %239 = vmatpush3.msra.mxu1 %v111_v6  ;;  %v211_v12 = vld [vmem:[%s357_s2] ss:$0 sm:$0xff]  ;;  %p257_p0 = scmp.ne.s32.totalorder %s204_s18, %s256_s3  ;;  %p262_p2 = scmp.lt.s32.totalorder %s256_s3, %s256_s3 }
   0x8   :  { %240 = vmatprep.subr.mxu1 %v278_v1  ;;  %v213_v17 = vld [vmem:[%s359_s4] ss:$0 sm:$0xff] }
   0x9   :  { %241 = vmatpush3.msra.mxu1 %v110_v7  ;;  %p263_p3 = por %p262_p2, %p261_p1 }
   0xa   :  { %242 = vmatprep.subr.mxu1 %v278_v1 }
   0xb   :  { %243 = vmatpush3.msra.mxu1 %v109_v8  ;;  %p264_p4 = pnand %p263_p3, %p257_p0 }
   0xc   :  { %244 = vmatprep.subr.mxu1 %v278_v1 }
   0xd   :  { %245 = vmatpush3.msra.mxu1 %v108_v9 }
   0xe   :  { %246 = vmatprep.subr.mxu1 %v278_v1 }
   0xf   :  { %247 = vmatpush3.msra.mxu1 %v107_v10 }
  0x10   :  { %248 = vmatprep.subr.mxu1 %v278_v1 }
  0x11   :  { %249 = vmatpush3.msra.mxu1 %v106_v11 }
  0xc5   :  { %v101_v13 = vpop.f32.mrf.mxu0 }
  0xc6   :  { %v102_v14 = vadd.f32 %v211_v12, %v101_v13 }
  0xc7   :  { %v233_v15 = vpop.f32.mrf.mxu0 }
  0xc8   :  { %v105_v16 = vmax.f32 %v102_v14, 0.0 }
  0xca   :  { %251 = vmatmul.mubr.msk.f32.vlgmr.msra.gmra.mxu1 %vm121_vm2, %v105_v16 }
 0x18a   :  { %v191_v18 = vpop.f32.mrf.mxu1 }
 0x18b   :  { %v192_v19 = vadd.f32 %v213_v17, %v191_v18 }
 0x18c   :  { %v252_v20 = vpop.f32.mrf.mxu1 }
 0x18d   :  { %196 = vst.msk [vmem:[#allocation2] sm:$0xff] %vm195_vm3, %v192_v19 }
 0x18e   :  { %267 = shalt.err (!%p264_p4)
}
 0x18f   :  { %206 = dma.vmem_to_hbm [thread:$0]  %s204_s18, 128, %s360_s5, [#allocation3]  }
 0x190   :  { %276 = dma.done.wait [#allocation3], 128  }
 0x191   :  { %277 = vsyncadd [#allocation3], 4294967168 }
 0x192   :  { %210 = vsyncpa [#allocation3], 1 }

</bundles_post_ra>
